<compile_context>
chip_gen: v5e
topology: v5e:2x2
jax: 0.10.0
libtpu: 0.0.40
codegen_flags: <defaults>
</compile_context>

<pallas_src>
import jax
import jax.numpy as jnp
from jax import lax
from jax.experimental import pallas as pl
from jax.experimental.pallas import tpu as pltpu


# --------------------------- fused GConv kernel -----------------------------
def _gconv_fused_kernel(m_ref, x_ref, w_ref, gb_ref, o_ref):
    # m_ref  : (B, J*N, N)  stacked graph operators (operator j = rows j*N:(j+1)*N)
    # x_ref  : (B*N, F)     node features, batches row-stacked
    # w_ref  : (J*F, O)     fc weight (original nn.Linear layout, transposed)
    # gb_ref : (2, O)       row 0 = BN gamma, row 1 = BN beta
    # o_ref  : (B*N, O)     normalized output
    B, JN, N = m_ref.shape
    JF, O = w_ref.shape
    J = JN // N
    f32 = jnp.float32

    # ---- gmul: one MXU push via a block-diagonal operator matrix ----------
    # m_bd[b*J*N + r, c*N + k] = m[b, r, k] if c == b else 0
    zero_blk = jnp.zeros((JN, N), f32)
    row_blocks = []
    for b in range(B):                       # B is tiny and static
        blocks = [m_ref[b] if c == b else zero_blk for c in range(B)]
        row_blocks.append(jnp.concatenate(blocks, axis=1))       # (J*N, B*N)
    m_bd = jnp.concatenate(row_blocks, axis=0)                    # (B*J*N, B*N)

    g_all = jnp.dot(m_bd, x_ref[...], preferred_element_type=f32)  # (B*J*N, F)

    # ---- re-layout for the FC: lane-concat the J blocks, row-stack batches -
    per_batch = []
    for b in range(B):
        base = b * JN
        per_batch.append(jnp.concatenate(
            [g_all[base + j * N: base + (j + 1) * N, :] for j in range(J)],
            axis=1))                                              # (N, J*F)
    x2d = jnp.concatenate(per_batch, axis=0)                      # (B*N, J*F)

    # ---- FC: one MXU push.  Bias intentionally omitted (cancelled by BN). --
    z = jnp.dot(x2d, w_ref[...], preferred_element_type=f32)      # (B*N, O)

    # ---- BatchNorm1d, training-mode: batch mean / biased variance ----------
    mean = jnp.mean(z, axis=0, keepdims=True)
    var = jnp.mean(jnp.square(z - mean), axis=0, keepdims=True)
    inv = lax.rsqrt(var + 1e-5)
    gamma = gb_ref[0:1, :]
    beta = gb_ref[1:2, :]
    o_ref[...] = gamma * (z - mean) * inv + beta


# ------------------------------- GConv module -------------------------------
def gconv_forward(inputs, matrix, fc_w, fc_b, bn_gamma, bn_beta):
    """GConv forward. inputs (B, N, F_in), matrix (B, N, N, J) -> (B, N, O).

    fc_b is accepted for interface parity with the PyTorch module but is not
    used: training-mode BatchNorm subtracts the per-feature batch mean, which
    cancels the per-feature constant bias exactly.
    """
    del fc_b
    B, N, F = inputs.shape
    J = matrix.shape[-1]
    O = fc_w.shape[-1]

    # Stack the J operators: (B, N, N, J) -> (B, J, N, N) -> (B, J*N, N).
    # Exactly torch.cat(torch.split(matrix, 1, 3), 1).squeeze(3).  Flagged for
    # fusion into the Pallas input DMA via allow_input_fusion below.
    m_stacked = jnp.transpose(matrix, (0, 3, 1, 2)).reshape(B, J * N, N)
    x2d = inputs.reshape(B * N, F)                        # free view
    gb = jnp.concatenate([bn_gamma.reshape(1, O),
                          bn_beta.reshape(1, O)], axis=0)  # (2, O) packed params

    vmem = pl.BlockSpec(memory_space=pltpu.MemorySpace.VMEM)
    out2d = pl.pallas_call(
        _gconv_fused_kernel,
        out_shape=jax.ShapeDtypeStruct((B * N, O), jnp.float32),
        in_specs=[vmem, vmem, vmem, vmem],
        out_specs=vmem,
        compiler_params=pltpu.CompilerParams(
            allow_input_fusion=[True, False, False, False]),
    )(m_stacked, x2d, fc_w, gb)

    return out2d.reshape(B, N, O)


# ------------------------------ pure-JAX reference --------------------------
def _gconv_ref(inputs, matrix, fc_w, fc_b, gamma, beta):
    # Faithful to the PyTorch module (including the fc bias).
    B, N, F = inputs.shape
    J = matrix.shape[-1]
    m = jnp.concatenate(jnp.split(matrix, J, axis=3), axis=1).squeeze(3)  # (B, J*N, N)
    g = jnp.einsum("bij,bjf->bif", m, inputs)                             # (B, J*N, F)
    x = jnp.concatenate(jnp.split(g, J, axis=1), axis=2)                  # (B, N, J*F)
    z = x.reshape(B * N, J * F) @ fc_w + fc_b
    mean = z.mean(0, keepdims=True)
    var = jnp.square(z - mean).mean(0, keepdims=True)
    z = gamma * (z - mean) * lax.rsqrt(var + 1e-5) + beta
    return z.reshape(B, N, -1)


if __name__ == "__main__":
    key = jax.random.PRNGKey(0)
    B, N, F_in, J, O = 2, 16, 32, 2, 32      # small shapes consistent with the module

    k1, k2, k3, k4, k5, k6 = jax.random.split(key, 6)
    inputs = jax.random.normal(k1, (B, N, F_in), dtype=jnp.float32)
    matrix = jax.random.normal(k2, (B, N, N, J), dtype=jnp.float32)

    in_features = F_in * J
    bound = 1.0 / (in_features ** 0.5)       # matches nn.Linear init scale
    fc_w = jax.random.uniform(k3, (in_features, O), jnp.float32, -bound, bound)
    fc_b = jax.random.uniform(k4, (O,), jnp.float32, -bound, bound)
    bn_gamma = jax.random.uniform(k5, (O,), jnp.float32, 0.5, 1.5)
    bn_beta = 0.1 * jax.random.normal(k6, (O,), dtype=jnp.float32)

    out = jax.jit(gconv_forward)(inputs, matrix, fc_w, fc_b, bn_gamma, bn_beta)
    jax.block_until_ready(out)
    assert out.shape == (B, N, O)

    ref = _gconv_ref(inputs, matrix, fc_w, fc_b, bn_gamma, bn_beta)
    assert jnp.allclose(out, ref, atol=1e-4, rtol=1e-4), "mismatch vs reference"

    print("KERNEL_OK")
</pallas_src>

<mosaic_0001>
module attributes {stable_mosaic.version = 11 : i64} {
  func.func @_gconv_fused_kernel(%arg0: memref<2x32x16xf32, #tpu.memory_space<vmem>>, %arg1: memref<32x32xf32, #tpu.memory_space<vmem>>, %arg2: memref<64x32xf32, #tpu.memory_space<vmem>>, %arg3: memref<2x32xf32, #tpu.memory_space<vmem>>, %arg4: memref<32x32xf32, #tpu.memory_space<vmem>>) attributes {dimension_semantics = [], scalar_prefetch = 0 : i64, scratch_operands = 0 : i64, tpu.core_type = #tpu.core_type<tc>} {
    %cst = arith.constant 0.000000e+00 : f32
    %0 = vector.broadcast %cst : f32 to vector<32x16xf32>
    %c0 = arith.constant 0 : index
    %c0_0 = arith.constant 0 : index
    %c0_1 = arith.constant 0 : index
    %1 = vector.load %arg0[%c0, %c0_0, %c0_1] : memref<2x32x16xf32, #tpu.memory_space<vmem>>, vector<1x32x16xf32>
    %2 = vector.shape_cast %1 : vector<1x32x16xf32> to vector<32x16xf32>
    %3 = tpu.concatenate %2, %0 in 1 : vector<32x16xf32>, vector<32x16xf32> -> vector<32x32xf32>
    %c1 = arith.constant 1 : index
    %c0_2 = arith.constant 0 : index
    %c0_3 = arith.constant 0 : index
    %4 = vector.load %arg0[%c1, %c0_2, %c0_3] : memref<2x32x16xf32, #tpu.memory_space<vmem>>, vector<1x32x16xf32>
    %5 = vector.shape_cast %4 : vector<1x32x16xf32> to vector<32x16xf32>
    %6 = tpu.concatenate %0, %5 in 1 : vector<32x16xf32>, vector<32x16xf32> -> vector<32x32xf32>
    %7 = tpu.concatenate %3, %6 in 0 : vector<32x32xf32>, vector<32x32xf32> -> vector<64x32xf32>
    %c0_4 = arith.constant 0 : index
    %c0_5 = arith.constant 0 : index
    %8 = vector.load %arg1[%c0_4, %c0_5] : memref<32x32xf32, #tpu.memory_space<vmem>>, vector<32x32xf32>
    %cst_6 = arith.constant dense<0.000000e+00> : vector<64x32xf32>
    %9 = tpu.matmul %7, %8, %cst_6 {dimension_numbers = #tpu.dot_dimension_numbers<[1], [0], [0], [1], [0, 0, 1, 1], [], []>} : vector<64x32xf32>, vector<32x32xf32>, vector<64x32xf32> -> vector<64x32xf32>
    %10 = vector.extract_strided_slice %9 {offsets = [0, 0], sizes = [16, 32], strides = [1, 1]} : vector<64x32xf32> to vector<16x32xf32>
    %11 = vector.extract_strided_slice %9 {offsets = [16, 0], sizes = [16, 32], strides = [1, 1]} : vector<64x32xf32> to vector<16x32xf32>
    %12 = tpu.concatenate %10, %11 in 1 : vector<16x32xf32>, vector<16x32xf32> -> vector<16x64xf32>
    %13 = vector.extract_strided_slice %9 {offsets = [32, 0], sizes = [16, 32], strides = [1, 1]} : vector<64x32xf32> to vector<16x32xf32>
    %14 = vector.extract_strided_slice %9 {offsets = [48, 0], sizes = [16, 32], strides = [1, 1]} : vector<64x32xf32> to vector<16x32xf32>
    %15 = tpu.concatenate %13, %14 in 1 : vector<16x32xf32>, vector<16x32xf32> -> vector<16x64xf32>
    %16 = tpu.concatenate %12, %15 in 0 : vector<16x64xf32>, vector<16x64xf32> -> vector<32x64xf32>
    %c0_7 = arith.constant 0 : index
    %c0_8 = arith.constant 0 : index
    %17 = vector.load %arg2[%c0_7, %c0_8] : memref<64x32xf32, #tpu.memory_space<vmem>>, vector<64x32xf32>
    %cst_9 = arith.constant dense<0.000000e+00> : vector<32x32xf32>
    %18 = tpu.matmul %16, %17, %cst_9 {dimension_numbers = #tpu.dot_dimension_numbers<[1], [0], [0], [1], [0, 0, 1, 1], [], []>} : vector<32x64xf32>, vector<64x32xf32>, vector<32x32xf32> -> vector<32x32xf32>
    %cst_10 = arith.constant dense<0.000000e+00> : vector<32xf32>
    %19 = vector.multi_reduction <add>, %18, %cst_10 [0] : vector<32x32xf32> to vector<32xf32>
    %20 = vector.shape_cast %19 : vector<32xf32> to vector<1x32xf32>
    %cst_11 = arith.constant 3.200000e+01 : f32
    %21 = vector.broadcast %cst_11 : f32 to vector<1x32xf32>
    %22 = arith.divf %20, %21 : vector<1x32xf32>
    %23 = vector.broadcast %22 : vector<1x32xf32> to vector<32x32xf32>
    %24 = arith.subf %18, %23 : vector<32x32xf32>
    %25 = arith.mulf %24, %24 : vector<32x32xf32>
    %cst_12 = arith.constant dense<0.000000e+00> : vector<32xf32>
    %26 = vector.multi_reduction <add>, %25, %cst_12 [0] : vector<32x32xf32> to vector<32xf32>
    %27 = vector.shape_cast %26 : vector<32xf32> to vector<1x32xf32>
    %cst_13 = arith.constant 3.200000e+01 : f32
    %28 = vector.broadcast %cst_13 : f32 to vector<1x32xf32>
    %29 = arith.divf %27, %28 : vector<1x32xf32>
    %cst_14 = arith.constant 9.99999974E-6 : f32
    %30 = vector.broadcast %cst_14 : f32 to vector<1x32xf32>
    %31 = arith.addf %29, %30 : vector<1x32xf32>
    %32 = math.rsqrt %31 : vector<1x32xf32>
    %c0_15 = arith.constant 0 : index
    %c0_16 = arith.constant 0 : index
    %33 = vector.load %arg3[%c0_15, %c0_16] : memref<2x32xf32, #tpu.memory_space<vmem>>, vector<1x32xf32>
    %c1_17 = arith.constant 1 : index
    %c0_18 = arith.constant 0 : index
    %34 = vector.load %arg3[%c1_17, %c0_18] : memref<2x32xf32, #tpu.memory_space<vmem>>, vector<1x32xf32>
    %35 = vector.broadcast %22 : vector<1x32xf32> to vector<32x32xf32>
    %36 = arith.subf %18, %35 : vector<32x32xf32>
    %37 = vector.broadcast %33 : vector<1x32xf32> to vector<32x32xf32>
    %38 = arith.mulf %37, %36 : vector<32x32xf32>
    %39 = vector.broadcast %32 : vector<1x32xf32> to vector<32x32xf32>
    %40 = arith.mulf %38, %39 : vector<32x32xf32>
    %41 = vector.broadcast %34 : vector<1x32xf32> to vector<32x32xf32>
    %42 = arith.addf %40, %41 : vector<32x32xf32>
    %c0_19 = arith.constant 0 : index
    %c0_20 = arith.constant 0 : index
    %43 = vector.load %arg4[%c0_19, %c0_20] : memref<32x32xf32, #tpu.memory_space<vmem>>, vector<32x32xf32>
    tpu.vector_store %arg4[%c0_19, %c0_20], %42 {strides = array<i32>} : memref<32x32xf32, #tpu.memory_space<vmem>>, vector<32x32xf32>,
    return
  }
}

</mosaic_0001>

<bundles_post_ra>
// kernel: gconv_forward.1
= control target key start
LH: loop header
LB: loop body
LE: loop exit
PB: predicated region body
PF: predicated region fallthrough
CT: control target
= control target key end

     0   :  { %s350_s21 = smov 16   ;;  %vm22_vm0 = vcmask 130048   ;;  %vm56_vm1 = vcmask 261120   ;;  %s490_s0 = inlined_call_operand.vmem [shape: f32[2,32,16], index: 0, kind: input, shape index: {}]   ;;  %s491_s1 = inlined_call_operand.vmem [shape: f32[32,32], index: 1, kind: input, shape index: {}]   ;;  %s492_s2 = inlined_call_operand.vmem [shape: f32[64,32], index: 2, kind: input, shape index: {}]   ;;  %s493_s3 = inlined_call_operand.vmem [shape: f32[2,32], index: 3, kind: input, shape index: {}]   ;;  %s494_s4 = inlined_call_operand.hbm [shape: f32[32,32], index: 4, kind: output, shape index: {}]  }
   0x1   :  { %v55_v0 = vld [vmem:[%s491_s1 + $0x18] sm:$0xff]  ;;  %v284_v1 = vld [vmem:[%s490_s0 + $0x20] sm:$0xff]  ;;  %v54_v2 = vld [vmem:[%s491_s1 + $0x10] sm:$0xff] }
   0x2   :  { %93 = vmatpush.msra.mxu0 %v55_v0  ;;  %36 = vrot.lane.b32.xlu0 %v284_v1, %s350_s21  ;;  %v53_v3 = vld [vmem:[%s491_s1 + $0x8] sm:$0xff]  ;;  %v18_v4 = vld [vmem:[%s490_s0] sm:$0xff]  ;;  %v286_v5 = vld [vmem:[%s490_s0 + $0x30] sm:$0xff] }
   0x3   :  { %300 = vmatpush.msra.mxu2 %v55_v0  ;;  %40 = vrot.lane.b32.xlu1 %v286_v5, %s350_s21  ;;  %v21_v6 = vld [vmem:[%s490_s0 + $0x18] sm:$0xff]  ;;  %v52_v7 = vld [vmem:[%s491_s1] sm:$0xff]  ;;  %v23_v8 = vsel %vm22_vm0, %v18_v4, 0.0 }
   0x4   :  { %94 = vmatpush.msra.mxu0 %v54_v2 }
   0x5   :  { %301 = vmatpush.msra.mxu2 %v54_v2 }
   0x6   :  { %95 = vmatpush.msra.mxu0 %v53_v3 }
   0x7   :  { %9 = vsyncpa [#allocation3], 0  ;;  %v285_v9 = vld [vmem:[%s490_s0 + $0x28] sm:$0xff]  ;;  %302 = vmatpush.msra.mxu2 %v53_v3  ;;  %v26_v10 = vsel %vm22_vm0, %v21_v6, 0.0  ;;  %v287_v11 = vld [vmem:[%s490_s0 + $0x38] sm:$0xff]  ;;  %vm150_vm2 = vcmask 523264  }
   0x8   :  { %96 = vmatpush.msra.mxu0 %v52_v7  ;;  %v19_v12 = vld [vmem:[%s490_s0 + $0x8] sm:$0xff]  ;;  %v20_v14 = vld [vmem:[%s490_s0 + $0x10] sm:$0xff]  ;;  %v149_v18 = vld [vmem:[%s492_s2 + $0x38] sm:$0xff]  ;;  %s351_s0 = smov 32   ;;  %v352_v49 = vmov 32.0   ;;  %s353_s6 = smov [#allocation2]  }
   0x9   :  { %288 = vmatmul.msk.f32.vlgmr.msra.gmra.mxu0 %vm56_vm1, %v23_v8  ;;  %303 = vmatpush.msra.mxu2 %v52_v7  ;;  %v24_v13 = vsel %vm22_vm0, %v19_v12, 0.0  ;;  %v25_v15 = vsel %vm22_vm0, %v20_v14, 0.0  ;;  %v148_v19 = vld [vmem:[%s492_s2 + $0x30] sm:$0xff]  ;;  %v147_v30 = vld [vmem:[%s492_s2 + $0x28] sm:$0xff]  ;;  %v146_v31 = vld [vmem:[%s492_s2 + $0x20] sm:$0xff]  ;;  %320 = vrcp.f32 %v352_v49  ;;  %s270_s7 = sshll.u32 %s353_s6, 4  ;;  %s271_s7 = int_to_ptr.vmem [resolvable:$true] %s270_s7 }
   0xa   :  { %38 = vrot.lane.b32.xlu0 %v285_v9, %s350_s21  ;;  %291 = vmatmul.msk.f32.vlgmr.msra.gmra.mxu2 %vm56_vm1, %v26_v10  ;;  %v145_v32 = vld [vmem:[%s492_s2 + $0x18] sm:$0xff]  ;;  %v144_v33 = vld [vmem:[%s492_s2 + $0x10] sm:$0xff]  ;;  %v143_v34 = vld [vmem:[%s492_s2 + $0x8] sm:$0xff]  ;;  %s272_s1 = sshll.u32 %s494_s4, 4  ;;  %s355_s10 = smov 8   ;;  %s273_s1 = int_to_ptr.hbm [resolvable:$true] %s272_s1 }
   0xb   :  { %42 = vrot.lane.b32.xlu1 %v287_v11, %s350_s21  ;;  %304 = vmatpush.msra.mxu3 %v149_v18  ;;  %v142_v35 = vld [vmem:[%s492_s2] sm:$0xff] }
   0xc   :  { %171 = vmatpush.msra.mxu1 %v149_v18 }
   0xd   :  { %305 = vmatpush.msra.mxu3 %v148_v19 }
   0xe   :  { %172 = vmatpush.msra.mxu1 %v148_v19 }
   0xf   :  { %306 = vmatpush.msra.mxu3 %v147_v30  ;;  %v321_v52 = vpop.eup %320 }
  0x10   :  { %173 = vmatpush.msra.mxu1 %v147_v30  ;;  %v206_v56 = vmul.f32 32.0, %v321_v52  ;;  %vm210_vm3 = vweird.f32 %v321_v52 }
  0x11   :  { %289 = vmatmul.msk.f32.gmra.mxu0 %vm56_vm1, %v24_v13  ;;  %307 = vmatpush.msra.mxu3 %v146_v31 }
  0x12   :  { %174 = vmatpush.msra.mxu1 %v146_v31  ;;  %v207_v61 = vsub.f32 1.0, %v206_v56 }
  0x13   :  { %308 = vmatpush.msra.mxu3 %v145_v32 }
  0x14   :  { %175 = vmatpush.msra.mxu1 %v145_v32  ;;  %v208_v0 = vmul.f32 %v321_v52, %v207_v61 }
  0x15   :  { %309 = vmatpush.msra.mxu3 %v144_v33 }
  0x16   :  { %176 = vmatpush.msra.mxu1 %v144_v33  ;;  %v209_v3 = vadd.f32 %v321_v52, %v208_v0 }
  0x17   :  { %310 = vmatpush.msra.mxu3 %v143_v34 }
  0x18   :  { %177 = vmatpush.msra.mxu1 %v143_v34  ;;  %v211_v6 = vsel %vm210_vm3, %v321_v52, %v209_v3 }
  0x19   :  { %290 = vmatmul.msk.f32.gmra.mxu0 %vm56_vm1, %v25_v15  ;;  %311 = vmatpush.msra.mxu3 %v142_v35 }
  0x1a   :  { %178 = vmatpush.msra.mxu1 %v142_v35 }
  0x74   :  { %v37_v16 = vpop.permute.xlu0 %36 }
  0x75   :  { %v48_v17 = vsel %vm22_vm0, 0.0, %v37_v16  ;;  %v41_v22 = vpop.permute.xlu1 %40 }
  0x76   :  { %292 = vmatmul.msk.f32.gmra.mxu2 %vm56_vm1, %v48_v17  ;;  %v50_v23 = vsel %vm22_vm0, 0.0, %v41_v22 }
  0x7c   :  { %v39_v20 = vpop.permute.xlu0 %38 }
  0x7d   :  { %v49_v21 = vsel %vm22_vm0, 0.0, %v39_v20  ;;  %v43_v25 = vpop.permute.xlu1 %42 }
  0x7e   :  { %293 = vmatmul.msk.f32.gmra.mxu2 %vm56_vm1, %v49_v21  ;;  %v51_v26 = vsel %vm22_vm0, 0.0, %v43_v25 }
  0x86   :  { %v98_v24 = vpop.f32.mrf.mxu0  ;;  %294 = vmatmul.msk.f32.gmra.mxu2 %vm56_vm1, %v50_v23 }
  0x8d   :  { %v107_v27 = vpop.f32.mrf.mxu2 }
  0x8e   :  { %v101_v28 = vpop.f32.mrf.mxu0  ;;  %295 = vmatmul.msk.f32.gmra.mxu2 %vm56_vm1, %v51_v26  ;;  %126 = vrot.lane.b32.xlu2 %v107_v27, %s351_s0 }
  0x96   :  { %v104_v29 = vpop.f32.mrf.mxu0 }
  0x97   :  { %124 = vrot.lane.b32.xlu1 %v104_v29, %s351_s0 }
  0xe8   :  { %v127_v36 = vpop.permute.xlu2 %126 }
  0xe9   :  { %v131_v37 = vsel %vm56_vm1, %v101_v28, %v127_v36  ;;  %v318_v36 = vld [vmem:[%s493_s3] ss:$0 sm:$0xff] }
  0xea   :  { %297 = vmatmul.msk.f32.vlgmr.msra.gmra.mxu3 %vm150_vm2, %v131_v37 }
  0xf9   :  { %v110_v38 = vpop.f32.mrf.mxu2 }
 0x101   :  { %v113_v39 = vpop.f32.mrf.mxu2 }
 0x109   :  { %v116_v40 = vpop.f32.mrf.mxu2  ;;  %v125_v41 = vpop.permute.xlu1 %124 }
 0x10a   :  { %134 = vrot.lane.b32.xlu2 %v116_v40, %s351_s0  ;;  %v130_v42 = vsel %vm56_vm1, %v98_v24, %v125_v41 }
 0x10b   :  { %296 = vmatmul.msk.f32.vlgmr.msra.gmra.mxu1 %vm150_vm2, %v130_v42 }
 0x111   :  { %v119_v43 = vpop.f32.mrf.mxu2 }
 0x112   :  { %136 = vrot.lane.b32.xlu0 %v119_v43, %s351_s0  ;;  %v319_v43 = vld [vmem:[%s493_s3 + $0x1] ss:$0 sm:$0xff]  ;;  %s354_s3 = smov 128  }
 0x164   :  { %v135_v44 = vpop.permute.xlu2 %134 }
 0x165   :  { %v140_v45 = vsel %vm56_vm1, %v110_v38, %v135_v44 }
 0x166   :  { %298 = vmatmul.msk.f32.gmra.mxu3 %vm150_vm2, %v140_v45 }
 0x16d   :  { %v183_v48 = vpop.f32.mrf.mxu3 }
 0x16e   :  { %v193_v54 = vsel %vm56_vm1, %v183_v48, 0.0 }
 0x184   :  { %v137_v46 = vpop.permute.xlu0 %136 }
 0x185   :  { %v141_v47 = vsel %vm56_vm1, %v113_v39, %v137_v46 }
 0x186   :  { %299 = vmatmul.msk.f32.gmra.mxu3 %vm150_vm2, %v141_v47 }
 0x188   :  { %v180_v50 = vpop.f32.mrf.mxu1 }
 0x189   :  { %v192_v53 = vsel %vm56_vm1, %v180_v50, 0.0 }
 0x18a   :  { %v194_v57 = vadd.f32 %v193_v54, %v192_v53 }
 0x1e9   :  { %v186_v51 = vpop.f32.mrf.mxu3 }
 0x1ea   :  { %v195_v55 = vsel %vm56_vm1, %v186_v51, 0.0 }
 0x1eb   :  { %v196_v58 = vadd.f32 %v195_v55, %v194_v57 }
 0x209   :  { %v189_v59 = vpop.f32.mrf.mxu3 }
 0x20a   :  { %v197_v60 = vsel %vm56_vm1, %v189_v59, 0.0 }
 0x20b   :  { %v198_v62 = vadd.f32 %v197_v60, %v196_v58 }
 0x20d   :  { %v199_v63 = vrot.slane %v198_v62, 4 }
 0x20f   :  { %v200_v1 = vadd.f32 %v199_v63, %v198_v62 }
 0x211   :  { %v201_v2 = vrot.slane %v200_v1, 2 }
 0x213   :  { %v202_v4 = vadd.f32 %v201_v2, %v200_v1 }
 0x215   :  { %v203_v5 = vrot.slane %v202_v4, 1 }
 0x217   :  { %v204_v7 = vadd.f32 %v203_v5, %v202_v4 }
 0x219   :  { %v212_v8 = vmul.f32 %v211_v6, %v204_v7 }
 0x21b   :  { %v213_v9 = vsub.f32 %v180_v50, %v212_v8  ;;  %v214_v10 = vsub.f32 %v183_v48, %v212_v8  ;;  %v215_v11 = vsub.f32 %v186_v51, %v212_v8  ;;  %v216_v12 = vsub.f32 %v189_v59, %v212_v8 }
 0x21d   :  { %v217_v13 = vmul.f32 %v213_v9, %v213_v9  ;;  %v218_v14 = vmul.f32 %v214_v10, %v214_v10  ;;  %v219_v15 = vmul.f32 %v215_v11, %v215_v11  ;;  %v220_v16 = vmul.f32 %v216_v12, %v216_v12 }
 0x21e   :  { %v249_v39 = vmul.f32 %v318_v36, %v213_v9  ;;  %v250_v40 = vmul.f32 %v318_v36, %v214_v10  ;;  %v251_v41 = vmul.f32 %v318_v36, %v215_v11  ;;  %v252_v42 = vmul.f32 %v318_v36, %v216_v12 }
 0x21f   :  { %v221_v17 = vsel %vm56_vm1, %v217_v13, 0.0  ;;  %v222_v18 = vsel %vm56_vm1, %v218_v14, 0.0  ;;  %v224_v20 = vsel %vm56_vm1, %v219_v15, 0.0  ;;  %v226_v22 = vsel %vm56_vm1, %v220_v16, 0.0 }
 0x220   :  { %v223_v19 = vadd.f32 %v222_v18, %v221_v17 }
 0x222   :  { %v225_v21 = vadd.f32 %v224_v20, %v223_v19 }
 0x224   :  { %v227_v23 = vadd.f32 %v226_v22, %v225_v21 }
 0x226   :  { %v228_v24 = vrot.slane %v227_v23, 4 }
 0x228   :  { %v229_v25 = vadd.f32 %v228_v24, %v227_v23 }
 0x22a   :  { %v230_v26 = vrot.slane %v229_v25, 2 }
 0x22c   :  { %v231_v27 = vadd.f32 %v230_v26, %v229_v25 }
 0x22e   :  { %v232_v28 = vrot.slane %v231_v27, 1 }
 0x230   :  { %v233_v29 = vadd.f32 %v232_v28, %v231_v27 }
 0x232   :  { %v234_v30 = vmul.f32 %v233_v29, %v211_v6 }
 0x234   :  { %v235_v31 = vadd.f32 1e-05, %v234_v30 }
 0x236   :  { %322 = vrsqrt.f32 %v235_v31  ;;  %vm242_vm5 = vweird.f32 %v235_v31 }
 0x23c   :  { %v323_v32 = vpop.eup %322 }
 0x23d   :  { %v237_v33 = vmul.f32 %v323_v32, %v235_v31  ;;  %vm243_vm4 = vweird.f32 %v323_v32 }
 0x23e   :  { %vm244_vm6 = vmor %vm242_vm5, %vm243_vm4 }
 0x23f   :  { %v238_v34 = vmul.f32 %v323_v32, %v237_v33 }
 0x241   :  { %v239_v35 = vmul.f32 0.5, %v238_v34 }
 0x243   :  { %v240_v37 = vsub.f32 1.5, %v239_v35 }
 0x245   :  { %v241_v38 = vmul.f32 %v323_v32, %v240_v37 }
 0x247   :  { %v245_v44 = vsel %vm244_vm6, %v323_v32, %v241_v38 }
 0x248   :  { %v253_v45 = vmul.f32 %v249_v39, %v245_v44  ;;  %v254_v46 = vmul.f32 %v250_v40, %v245_v44  ;;  %v255_v47 = vmul.f32 %v251_v41, %v245_v44  ;;  %v256_v48 = vmul.f32 %v252_v42, %v245_v44 }
 0x24a   :  { %v258_v49 = vadd.f32 %v319_v43, %v253_v45  ;;  %v259_v50 = vadd.f32 %v319_v43, %v254_v46  ;;  %v260_v51 = vadd.f32 %v319_v43, %v255_v47  ;;  %v261_v52 = vadd.f32 %v319_v43, %v256_v48 }
 0x24c   :  { %262 = vst.msk [vmem:[#allocation2] sm:$0xff] %vm56_vm1, %v258_v49 }
 0x24d   :  { %263 = vst.msk [vmem:[#allocation2 + $0x8] sm:$0xff] %vm56_vm1, %v259_v50 }
 0x24e   :  { %264 = vst.msk [vmem:[#allocation2 + $0x10] sm:$0xff] %vm56_vm1, %v260_v51 }
 0x24f   :  { %265 = vst.msk [vmem:[#allocation2 + $0x18] sm:$0xff] %vm56_vm1, %v261_v52 }
 0x250   :  { %278 = dma.vmem_to_hbm [thread:$0]  %s271_s7, 512, %s273_s1, [#allocation3], %s354_s3, %s354_s3, %s355_s10  }
 0x251   :  { %348 = dma.done.wait [#allocation3], 512  }
 0x252   :  { %349 = vsyncadd [#allocation3], 4294966784 }
 0x253   :  { %283 = vsyncpa [#allocation3], 1 }

</bundles_post_ra>
